<compile_context>
chip_gen: v6e
topology: v6e:2x2x1
jax: 0.10.0
libtpu: 0.0.40
codegen_flags: <defaults>
</compile_context>

<pallas_src>
import math

import jax
import jax.numpy as jnp
from jax.experimental import pallas as pl
from jax.experimental.pallas import tpu as pltpu

IN_DIM = 24        # Model.input_shape
HIDDEN = 64        # channels
OUT_DIM = 4        # Model.output_shape
OUT_PAD = 128      # lane-dense padded width for the last matmul (MXU only)
NEG_SLOPE = 0.01   # nn.LeakyReLU default
TB_MAX = 1024      # max batch-tile rows (well under VMEM on v5e/v6e/v7x)


def _leaky_relu(x):
    return jnp.where(x > 0, x, NEG_SLOPE * x)


def _cdiv(a, b):
    return -(-a // b)


def _round_up(n, m):
    return _cdiv(n, m) * m


def _choose_tile(B):
    """Ragged-aware batch tile: waste < one tile, >= 2 grid steps when possible."""
    B8 = _round_up(max(B, 1), 8)
    if B8 <= 16:                       # tiny batch: one small tile
        return B8
    # Split into at least two tiles (v7x megacore), capped at TB_MAX.
    return min(TB_MAX, _round_up(_cdiv(B8, 2), 8))


def mlp_kernel(x_ref, w1_ref, w2_ref, w3_ref, w4_ref, b_ref, o_ref):
    """One batch tile of the 24->64->64->64->4 MLP, LeakyReLU after every layer.

    Weights are bf16, activations/accumulators are f32.  The last layer is
    computed 128-wide for the MXU but only the first 4 columns are stored
    (lane-masked store; writeback traffic is 16 B/row, not 512 B/row).
    """
    x = x_ref[...]          # (TB, 24)  f32
    b = b_ref[...]          # (4, 128)  f32 packed biases

    h = jnp.dot(x.astype(jnp.bfloat16), w1_ref[...],
                preferred_element_type=jnp.float32) + b[0:1, :HIDDEN]
    h = _leaky_relu(h)

    h = jnp.dot(h.astype(jnp.bfloat16), w2_ref[...],
                preferred_element_type=jnp.float32) + b[1:2, :HIDDEN]
    h = _leaky_relu(h)

    h = jnp.dot(h.astype(jnp.bfloat16), w3_ref[...],
                preferred_element_type=jnp.float32) + b[2:3, :HIDDEN]
    h = _leaky_relu(h)

    h = jnp.dot(h.astype(jnp.bfloat16), w4_ref[...],
                preferred_element_type=jnp.float32)          # (TB, 128)
    o_ref[...] = _leaky_relu(h[:, :OUT_DIM] + b[3:4, :OUT_DIM])  # (TB, 4)


def pack_params(params):
    """(w, b) f32 pairs -> bf16 weights (w4 padded to 128 cols) + [4,128] f32 biases."""
    (w1, b1), (w2, b2), (w3, b3), (w4, b4) = params

    w4p = jnp.zeros((HIDDEN, OUT_PAD), jnp.float32).at[:, :OUT_DIM].set(w4)

    bpack = jnp.zeros((4, OUT_PAD), jnp.float32)
    bpack = bpack.at[0, :HIDDEN].set(b1.reshape(-1))
    bpack = bpack.at[1, :HIDDEN].set(b2.reshape(-1))
    bpack = bpack.at[2, :HIDDEN].set(b3.reshape(-1))
    bpack = bpack.at[3, :OUT_DIM].set(b4.reshape(-1))

    return (w1.astype(jnp.bfloat16), w2.astype(jnp.bfloat16),
            w3.astype(jnp.bfloat16), w4p.astype(jnp.bfloat16), bpack)


def mlp_forward(x, packed):
    w1, w2, w3, w4p, bpack = packed
    B = x.shape[0]

    TB = _choose_tile(B)
    B_pad = _round_up(B, TB)
    if B_pad != B:
        x = jnp.pad(x, ((0, B_pad - B), (0, 0)))

    # Advisory cost hint so XLA schedules around this small custom call.
    flops = 2 * B_pad * (IN_DIM * HIDDEN + 2 * HIDDEN * HIDDEN + HIDDEN * OUT_PAD)
    bytes_accessed = (B_pad * IN_DIM * 4 + B_pad * OUT_DIM * 4
                      + 2 * (w1.size + w2.size + w3.size + w4p.size)
                      + 4 * bpack.size)

    out = pl.pallas_call(
        mlp_kernel,
        out_shape=jax.ShapeDtypeStruct((B_pad, OUT_DIM), jnp.float32),
        grid=(B_pad // TB,),
        in_specs=[
            pl.BlockSpec((TB, IN_DIM), lambda i: (i, 0)),       # x tile (pipelined)
            pl.BlockSpec((IN_DIM, HIDDEN), lambda i: (0, 0)),   # weights: resident
            pl.BlockSpec((HIDDEN, HIDDEN), lambda i: (0, 0)),
            pl.BlockSpec((HIDDEN, HIDDEN), lambda i: (0, 0)),
            pl.BlockSpec((HIDDEN, OUT_PAD), lambda i: (0, 0)),
            pl.BlockSpec((4, OUT_PAD), lambda i: (0, 0)),       # packed biases
        ],
        out_specs=pl.BlockSpec((TB, OUT_DIM), lambda i: (i, 0)),  # narrow f32 store
        compiler_params=pltpu.CompilerParams(
            dimension_semantics=("parallel",)),                   # megacore on v7x
        cost_estimate=pl.CostEstimate(
            flops=flops, transcendentals=0, bytes_accessed=bytes_accessed),
    )(x, w1, w2, w3, w4p, bpack)

    # Only a row slice remains (ragged batches); no column slice re-read.
    return out if B_pad == B else out[:B]


def init_linear(key, fan_in, fan_out):
    """Deterministic init matching PyTorch nn.Linear default U[-1/sqrt(fan_in), ...]."""
    kw, kb = jax.random.split(key)
    bound = 1.0 / math.sqrt(fan_in)
    # Stored as [in, out] so the kernel computes x @ W.
    w = jax.random.uniform(kw, (fan_in, fan_out), jnp.float32, -bound, bound)
    b = jax.random.uniform(kb, (1, fan_out), jnp.float32, -bound, bound)
    return w, b


def reference_forward_f32(x, params):
    h = x
    for w, b in params:
        h = _leaky_relu(jnp.dot(h, w) + b)
    return h


def reference_forward_bf16(x, params):
    """Same numerics the kernel computes: bf16 operands, f32 accumulation."""
    h = x
    for w, b in params:
        h = jnp.dot(h.astype(jnp.bfloat16), w.astype(jnp.bfloat16),
                    preferred_element_type=jnp.float32) + b
        h = _leaky_relu(h)
    return h


def _check(x, params, packed, tag):
    out = jax.block_until_ready(mlp_forward(x, packed))
    assert out.shape == (x.shape[0], OUT_DIM)
    assert jnp.allclose(out, reference_forward_bf16(x, params),
                        atol=1e-3, rtol=1e-3), f"mismatch vs bf16 reference ({tag})"
    assert jnp.allclose(out, reference_forward_f32(x, params),
                        atol=5e-2, rtol=5e-2), f"mismatch vs f32 reference ({tag})"


if __name__ == "__main__":
    key = jax.random.PRNGKey(0)
    k_x, k_x2, k_x3, k1, k2, k3, k4 = jax.random.split(key, 7)

    params = (
        init_linear(k1, IN_DIM, HIDDEN),
        init_linear(k2, HIDDEN, HIDDEN),
        init_linear(k3, HIDDEN, HIDDEN),
        init_linear(k4, HIDDEN, OUT_DIM),
    )
    packed = pack_params(params)

    # --- small batch (matches the original module usage): single 8-row tile --
    _check(jax.random.normal(k_x, (8, IN_DIM), jnp.float32), params, packed, "B=8")

    # --- ragged batch: TB=152, grid=2, pad waste = 4 rows ---------------------
    _check(jax.random.normal(k_x2, (300, IN_DIM), jnp.float32), params, packed, "B=300")

    # --- larger batch: TB capped at 1024, multi-step grid ---------------------
    _check(jax.random.normal(k_x3, (2500, IN_DIM), jnp.float32), params, packed, "B=2500")

    print("KERNEL_OK")
</pallas_src>

<mosaic_0001>
module attributes {stable_mosaic.version = 11 : i64} {
  func.func @mlp_kernel(%arg0: i32, %arg1: memref<8x24xf32, #tpu.memory_space<vmem>>, %arg2: memref<24x64xbf16, #tpu.memory_space<vmem>>, %arg3: memref<64x64xbf16, #tpu.memory_space<vmem>>, %arg4: memref<64x64xbf16, #tpu.memory_space<vmem>>, %arg5: memref<64x128xbf16, #tpu.memory_space<vmem>>, %arg6: memref<4x128xf32, #tpu.memory_space<vmem>>, %arg7: memref<8x4xf32, #tpu.memory_space<vmem>>) attributes {dimension_semantics = [#tpu.dimension_semantics<parallel>], iteration_bounds = array<i64: 1>, scalar_prefetch = 0 : i64, scratch_operands = 0 : i64, tpu.core_type = #tpu.core_type<tc>, window_params = [{transform_indices = @transform_0, window_bounds = array<i64: 8, 24>}, {pipeline_mode = #tpu.pipeline_mode<synchronous>, transform_indices = @transform_1, window_bounds = array<i64: 24, 64>}, {pipeline_mode = #tpu.pipeline_mode<synchronous>, transform_indices = @transform_2, window_bounds = array<i64: 64, 64>}, {pipeline_mode = #tpu.pipeline_mode<synchronous>, transform_indices = @transform_3, window_bounds = array<i64: 64, 64>}, {pipeline_mode = #tpu.pipeline_mode<synchronous>, transform_indices = @transform_4, window_bounds = array<i64: 64, 128>}, {pipeline_mode = #tpu.pipeline_mode<synchronous>, transform_indices = @transform_5, window_bounds = array<i64: 4, 128>}, {transform_indices = @transform_6, window_bounds = array<i64: 8, 4>}]} {
    %c0 = arith.constant 0 : index
    %c0_0 = arith.constant 0 : index
    %0 = vector.load %arg1[%c0, %c0_0] : memref<8x24xf32, #tpu.memory_space<vmem>>, vector<8x24xf32>
    %c0_1 = arith.constant 0 : index
    %c0_2 = arith.constant 0 : index
    %1 = vector.load %arg6[%c0_1, %c0_2] : memref<4x128xf32, #tpu.memory_space<vmem>>, vector<4x128xf32>
    %2 = arith.truncf %0 : vector<8x24xf32> to vector<8x24xbf16>
    %c0_3 = arith.constant 0 : index
    %c0_4 = arith.constant 0 : index
    %3 = vector.load %arg2[%c0_3, %c0_4] : memref<24x64xbf16, #tpu.memory_space<vmem>>, vector<24x64xbf16>
    %cst = arith.constant dense<0.000000e+00> : vector<8x64xf32>
    %4 = tpu.matmul %2, %3, %cst {dimension_numbers = #tpu.dot_dimension_numbers<[1], [0], [0], [1], [0, 0, 1, 1], [], []>} : vector<8x24xbf16>, vector<24x64xbf16>, vector<8x64xf32> -> vector<8x64xf32>
    %5 = vector.extract_strided_slice %1 {offsets = [0, 0], sizes = [1, 64], strides = [1, 1]} : vector<4x128xf32> to vector<1x64xf32>
    %6 = vector.broadcast %5 : vector<1x64xf32> to vector<8x64xf32>
    %7 = arith.addf %4, %6 : vector<8x64xf32>
    %cst_5 = arith.constant 0.000000e+00 : f32
    %8 = vector.broadcast %cst_5 : f32 to vector<8x64xf32>
    %9 = arith.cmpf ogt, %7, %8 : vector<8x64xf32>
    %cst_6 = arith.constant 0.00999999977 : f32
    %10 = vector.broadcast %cst_6 : f32 to vector<8x64xf32>
    %11 = arith.mulf %10, %7 : vector<8x64xf32>
    %12 = arith.select %9, %7, %11 : vector<8x64xi1>, vector<8x64xf32>
    %13 = arith.truncf %12 : vector<8x64xf32> to vector<8x64xbf16>
    %c0_7 = arith.constant 0 : index
    %c0_8 = arith.constant 0 : index
    %14 = vector.load %arg3[%c0_7, %c0_8] : memref<64x64xbf16, #tpu.memory_space<vmem>>, vector<64x64xbf16>
    %cst_9 = arith.constant dense<0.000000e+00> : vector<8x64xf32>
    %15 = tpu.matmul %13, %14, %cst_9 {dimension_numbers = #tpu.dot_dimension_numbers<[1], [0], [0], [1], [0, 0, 1, 1], [], []>} : vector<8x64xbf16>, vector<64x64xbf16>, vector<8x64xf32> -> vector<8x64xf32>
    %16 = vector.extract_strided_slice %1 {offsets = [1, 0], sizes = [1, 64], strides = [1, 1]} : vector<4x128xf32> to vector<1x64xf32>
    %17 = vector.broadcast %16 : vector<1x64xf32> to vector<8x64xf32>
    %18 = arith.addf %15, %17 : vector<8x64xf32>
    %cst_10 = arith.constant 0.000000e+00 : f32
    %19 = vector.broadcast %cst_10 : f32 to vector<8x64xf32>
    %20 = arith.cmpf ogt, %18, %19 : vector<8x64xf32>
    %cst_11 = arith.constant 0.00999999977 : f32
    %21 = vector.broadcast %cst_11 : f32 to vector<8x64xf32>
    %22 = arith.mulf %21, %18 : vector<8x64xf32>
    %23 = arith.select %20, %18, %22 : vector<8x64xi1>, vector<8x64xf32>
    %24 = arith.truncf %23 : vector<8x64xf32> to vector<8x64xbf16>
    %c0_12 = arith.constant 0 : index
    %c0_13 = arith.constant 0 : index
    %25 = vector.load %arg4[%c0_12, %c0_13] : memref<64x64xbf16, #tpu.memory_space<vmem>>, vector<64x64xbf16>
    %cst_14 = arith.constant dense<0.000000e+00> : vector<8x64xf32>
    %26 = tpu.matmul %24, %25, %cst_14 {dimension_numbers = #tpu.dot_dimension_numbers<[1], [0], [0], [1], [0, 0, 1, 1], [], []>} : vector<8x64xbf16>, vector<64x64xbf16>, vector<8x64xf32> -> vector<8x64xf32>
    %27 = vector.extract_strided_slice %1 {offsets = [2, 0], sizes = [1, 64], strides = [1, 1]} : vector<4x128xf32> to vector<1x64xf32>
    %28 = vector.broadcast %27 : vector<1x64xf32> to vector<8x64xf32>
    %29 = arith.addf %26, %28 : vector<8x64xf32>
    %cst_15 = arith.constant 0.000000e+00 : f32
    %30 = vector.broadcast %cst_15 : f32 to vector<8x64xf32>
    %31 = arith.cmpf ogt, %29, %30 : vector<8x64xf32>
    %cst_16 = arith.constant 0.00999999977 : f32
    %32 = vector.broadcast %cst_16 : f32 to vector<8x64xf32>
    %33 = arith.mulf %32, %29 : vector<8x64xf32>
    %34 = arith.select %31, %29, %33 : vector<8x64xi1>, vector<8x64xf32>
    %35 = arith.truncf %34 : vector<8x64xf32> to vector<8x64xbf16>
    %c0_17 = arith.constant 0 : index
    %c0_18 = arith.constant 0 : index
    %36 = vector.load %arg5[%c0_17, %c0_18] : memref<64x128xbf16, #tpu.memory_space<vmem>>, vector<64x128xbf16>
    %cst_19 = arith.constant dense<0.000000e+00> : vector<8x128xf32>
    %37 = tpu.matmul %35, %36, %cst_19 {dimension_numbers = #tpu.dot_dimension_numbers<[1], [0], [0], [1], [0, 0, 1, 1], [], []>} : vector<8x64xbf16>, vector<64x128xbf16>, vector<8x128xf32> -> vector<8x128xf32>
    %38 = vector.extract_strided_slice %37 {offsets = [0, 0], sizes = [8, 4], strides = [1, 1]} : vector<8x128xf32> to vector<8x4xf32>
    %39 = vector.extract_strided_slice %1 {offsets = [3, 0], sizes = [1, 4], strides = [1, 1]} : vector<4x128xf32> to vector<1x4xf32>
    %40 = vector.broadcast %39 : vector<1x4xf32> to vector<8x4xf32>
    %41 = arith.addf %38, %40 : vector<8x4xf32>
    %cst_20 = arith.constant 0.000000e+00 : f32
    %42 = vector.broadcast %cst_20 : f32 to vector<8x4xf32>
    %43 = arith.cmpf ogt, %41, %42 : vector<8x4xf32>
    %cst_21 = arith.constant 0.00999999977 : f32
    %44 = vector.broadcast %cst_21 : f32 to vector<8x4xf32>
    %45 = arith.mulf %44, %41 : vector<8x4xf32>
    %46 = arith.select %43, %41, %45 : vector<8x4xi1>, vector<8x4xf32>
    %c0_22 = arith.constant 0 : index
    %c0_23 = arith.constant 0 : index
    %47 = vector.load %arg7[%c0_22, %c0_23] : memref<8x4xf32, #tpu.memory_space<vmem>>, vector<8x4xf32>
    tpu.vector_store %arg7[%c0_22, %c0_23], %46 {strides = array<i32>} : memref<8x4xf32, #tpu.memory_space<vmem>>, vector<8x4xf32>,
    return
  }
  func.func @transform_0(%arg0: i32) -> (i32, i32) {
    %c0_i32 = arith.constant 0 : i32
    %c0_i32_0 = arith.constant 0 : i32
    return %arg0, %c0_i32 : i32, i32
  }
  func.func @transform_1(%arg0: i32) -> (i32, i32) {
    %c0_i32 = arith.constant 0 : i32
    %c0_i32_0 = arith.constant 0 : i32
    %c0_i32_1 = arith.constant 0 : i32
    return %c0_i32, %c0_i32_0 : i32, i32
  }
  func.func @transform_2(%arg0: i32) -> (i32, i32) {
    %c0_i32 = arith.constant 0 : i32
    %c0_i32_0 = arith.constant 0 : i32
    %c0_i32_1 = arith.constant 0 : i32
    return %c0_i32, %c0_i32_0 : i32, i32
  }
  func.func @transform_3(%arg0: i32) -> (i32, i32) {
    %c0_i32 = arith.constant 0 : i32
    %c0_i32_0 = arith.constant 0 : i32
    %c0_i32_1 = arith.constant 0 : i32
    return %c0_i32, %c0_i32_0 : i32, i32
  }
  func.func @transform_4(%arg0: i32) -> (i32, i32) {
    %c0_i32 = arith.constant 0 : i32
    %c0_i32_0 = arith.constant 0 : i32
    %c0_i32_1 = arith.constant 0 : i32
    return %c0_i32, %c0_i32_0 : i32, i32
  }
  func.func @transform_5(%arg0: i32) -> (i32, i32) {
    %c0_i32 = arith.constant 0 : i32
    %c0_i32_0 = arith.constant 0 : i32
    %c0_i32_1 = arith.constant 0 : i32
    return %c0_i32, %c0_i32_0 : i32, i32
  }
  func.func @transform_6(%arg0: i32) -> (i32, i32) {
    %c0_i32 = arith.constant 0 : i32
    %c0_i32_0 = arith.constant 0 : i32
    return %arg0, %c0_i32 : i32, i32
  }
}

</mosaic_0001>

<bundles_post_ra>
// kernel: tpu_custom_call.1
= control target key start
LH: loop header
LB: loop body
LE: loop exit
PB: predicated region body
PF: predicated region fallthrough
CT: control target
= control target key end

     0   :  { %11 = vsyncpa [#allocation3], 0  ;;  %s731_s0 = inlined_call_operand.hbm [shape: f32[8,24], index: 0, kind: input, shape index: {}]   ;;  %s732_s1 = inlined_call_operand.hbm [shape: bf16[24,64], index: 1, kind: input, shape index: {}]   ;;  %s733_s2 = inlined_call_operand.hbm [shape: bf16[64,64], index: 2, kind: input, shape index: {}]   ;;  %s734_s3 = inlined_call_operand.hbm [shape: bf16[64,64], index: 3, kind: input, shape index: {}]   ;;  %s735_s4 = inlined_call_operand.hbm [shape: bf16[64,128], index: 4, kind: input, shape index: {}]   ;;  %s736_s5 = inlined_call_operand.vmem [shape: f32[4,128], index: 5, kind: input, shape index: {}]   ;;  %s737_s6 = inlined_call_operand.vmem [shape: f32[8,4], index: 6, kind: output, shape index: {}]  }
   0x1   :  { %12 = vsyncpa [#allocation5], 0 }
   0x2   :  { %13 = vsyncpa [#allocation8], 0  ;;  %s629_s21 = smov [#allocation4]  }
   0x3   :  { %s29_s22 = sshll.u32 %s629_s21, 4  ;;  %s30_s22 = int_to_ptr.vmem [resolvable:$true] %s29_s22 }
   0x4   :  { %s531_s23 = scalar_lea.vmem %s30_s22, 192  ;;  %p536_p1 = scmp.lt.s32.totalorder %s30_s22, %s30_s22 }
   0x5   :  { %p532_p0 = scmp.ne.s32.totalorder %s30_s22, %s531_s23  ;;  %p537_p2 = scmp.lt.s32.totalorder %s531_s23, %s531_s23 }
   0x7   :  { %p538_p3 = por %p537_p2, %p536_p1 }
   0x9   :  { %p539_p4 = pnand %p538_p3, %p532_p0 }
   0xb   :  { %542 = shalt.err (!%p539_p4)
}
   0xc   :  { %s630_s24 = smov 64   ;;  %s631_s25 = smov 4  }
   0xd   :  { %35 = dma.hbm_to_vmem [thread:$0]  %s732_s1, 192, %s30_s22, [#allocation5], %s630_s24, %s630_s24, %s631_s25  }
   0xe   :  { %s632_s28 = smov [#allocation7]   ;;  %s633_s30 = smov [#allocation2]  }
   0xf   :  { %s53_s29 = sshll.u32 %s632_s28, 4  ;;  %s20_s7 = sshll.u32 %s633_s30, 4  ;;  %s54_s29 = int_to_ptr.vmem [resolvable:$true] %s53_s29  ;;  %s21_s7 = int_to_ptr.vmem [resolvable:$true] %s20_s7 }
  0x10   :  { %s551_s8 = scalar_lea.vmem %s54_s29, 512  ;;  %p556_p6 = scmp.lt.s32.totalorder %s54_s29, %s54_s29 }
  0x11   :  { %p552_p5 = scmp.ne.s32.totalorder %s54_s29, %s551_s8  ;;  %p557_p7 = scmp.lt.s32.totalorder %s551_s8, %s551_s8 }
  0x13   :  { %p558_p8 = por %p557_p7, %p556_p6 }
  0x15   :  { %p559_p9 = pnand %p558_p8, %p552_p5 }
  0x17   :  { %562 = shalt.err (!%p559_p9)
}
  0x18   :  { %59 = dma.hbm_to_vmem [thread:$0]  %s734_s3, 512, %s54_s29, [#allocation8], %s630_s24, %s630_s24, %s631_s25  }
  0x19   :  { %s571_s1 = scalar_lea.vmem %s21_s7, 128  ;;  %p576_p11 = scmp.lt.s32.totalorder %s21_s7, %s21_s7 }
  0x1a   :  { %p572_p10 = scmp.ne.s32.totalorder %s21_s7, %s571_s1  ;;  %p577_p12 = scmp.lt.s32.totalorder %s571_s1, %s571_s1 }
  0x1c   :  { %p578_p13 = por %p577_p12, %p576_p11 }
  0x1e   :  { %p579_p0 = pnand %p578_p13, %p572_p10 }
  0x20   :  { %582 = shalt.err (!%p579_p0)
}
  0x21   :  { %23 = dma.hbm_to_vmem [thread:$0]  %s731_s0, 128, %s21_s7, [#allocation3]  }
  0x22   :  { %s634_s13 = smov [#allocation6]   ;;  %s635_s15 = smov [#allocation9]  }
  0x23   :  { %s41_s14 = sshll.u32 %s634_s13, 4  ;;  %s65_s16 = sshll.u32 %s635_s15, 4  ;;  %s42_s14 = int_to_ptr.vmem [resolvable:$true] %s41_s14  ;;  %s66_s16 = int_to_ptr.vmem [resolvable:$true] %s65_s16 }
  0x24   :  { %s591_s17 = scalar_lea.vmem %s42_s14, 512  ;;  %p596_p2 = scmp.lt.s32.totalorder %s42_s14, %s42_s14 }
  0x25   :  { %p592_p1 = scmp.ne.s32.totalorder %s42_s14, %s591_s17  ;;  %p597_p3 = scmp.lt.s32.totalorder %s591_s17, %s591_s17 }
  0x27   :  { %p598_p4 = por %p597_p3, %p596_p2 }
  0x29   :  { %p599_p5 = pnand %p598_p4, %p592_p1 }
  0x2b   :  { %602 = shalt.err (!%p599_p5)
}
  0x2c   :  { %47 = dma.hbm_to_vmem [thread:$0]  %s733_s2, 512, %s42_s14, [#allocation5], %s630_s24, %s630_s24, %s631_s25  }
  0x2d   :  { %s611_s0 = scalar_lea.vmem %s66_s16, 512  ;;  %p616_p7 = scmp.lt.s32.totalorder %s66_s16, %s66_s16 }
  0x2e   :  { %p612_p6 = scmp.ne.s32.totalorder %s66_s16, %s611_s0  ;;  %p617_p8 = scmp.lt.s32.totalorder %s611_s0, %s611_s0 }
  0x30   :  { %p618_p9 = por %p617_p8, %p616_p7 }
  0x32   :  { %p619_p10 = pnand %p618_p9, %p612_p6 }
  0x34   :  { %622 = shalt.err (!%p619_p10)
}
  0x35   :  { %71 = dma.hbm_to_vmem [thread:$0]  %s735_s4, 512, %s66_s16, [#allocation8], %s630_s24, %s630_s24, %s631_s25  }
  0x36   :  { %623 = dma.done.wait [#allocation3], 128  }
  0x37   :  { %624 = vsyncadd [#allocation3], 4294967168 }
  0x38   :  { %625 = dma.done.wait [#allocation5], 704  }
  0x39   :  { %626 = vsyncadd [#allocation5], 4294966592 }
  0x3a   :  { %627 = dma.done.wait [#allocation8], 1024  }
  0x3b   :  { %628 = vsyncadd [#allocation8], 4294966272  ;;  %v636_v0 = vmov 0.0   ;;  %vm637_vm0 = vmmov 0   ;;  %vm113_vm1 = vcmask 1043456   ;;  %v510_v2 = vld [vmem:[#allocation4] sm:$0xff]   ;;  %v96_v12 = vlaneseq }
  0x3c   :  { %456 = vmatprep.subr.bf16.mxu0 %v636_v0  ;;  %460 = vmatprep.mubr.msk.bf16.mxu0 %vm637_vm0, %v636_v0  ;;  %v509_v1 = vld [vmem:[#allocation4 + $0x8] ss:$0 sps:$4 sm:$0xff]   ;;  %v90_v5 = vld [vmem:[#allocation2] sm:$0xff]  ;;  %vm109_vm2 = vcmask 195584   ;;  %v514_v9 = vld [vmem:[#allocation6] sm:$0xff]   ;;  %vm197_vm4 = vcmask 523264  }
  0x3d   :  { %464 = vmatprep.subr.bf16.mxu1 %v636_v0  ;;  %472 = vmatprep.mubr.msk.bf16.mxu1 %vm637_vm0, %v636_v0  ;;  %v115_v3 = vsel %vm113_vm1, %v509_v1, 0  ;;  %v511_v4 = vld [vmem:[#allocation6 + $0x18] sm:$0xff]   ;;  %v512_v6 = vld [vmem:[#allocation6 + $0x10] sm:$0xff]   ;;  %v92_v7 = vpack.c.bf16 %v90_v5, %v90_v5  ;;  %v513_v8 = vld [vmem:[#allocation6 + $0x8] sm:$0xff]   ;;  %v97_v13 = vshrl.u32 %v96_v12, 7  ;;  %vm411_vm8 = vcmask 31744  }
  0x3e   :  { %457 = vmatpush3.bf16.msra.mxu0 %v115_v3  ;;  %465 = vmatpush3.bf16.msra.mxu1 %v511_v4  ;;  %v515_v10 = vld [vmem:[#allocation7 + $0x18] sm:$0xff]   ;;  %v516_v11 = vld [vmem:[#allocation7 + $0x10] sm:$0xff]   ;;  %v91_v15 = vld [vmem:[%s736_s5] sm:$0xf] }
  0x3f   :  { %458 = vmatprep.subr.bf16.mxu0 %v636_v0  ;;  %466 = vmatprep.subr.bf16.mxu1 %v636_v0  ;;  %v98_v14 = vsub.s32 0, %v97_v13  ;;  %v517_v25 = vld [vmem:[#allocation7 + $0x8] sm:$0xff]   ;;  %v518_v26 = vld [vmem:[#allocation7] sm:$0xff]   ;;  %v519_v27 = vld [vmem:[#allocation9 + $0x18] sm:$0xff]   ;;  %v171_v29 = vsub.s32 1, %v97_v13  ;;  %v255_v41 = vsub.s32 2, %v97_v13 }
  0x40   :  { %v520_v28 = vld [vmem:[#allocation9 + $0x10] sm:$0xff]   ;;  %v521_v39 = vld [vmem:[#allocation9 + $0x8] sm:$0xff]   ;;  %v522_v40 = vld [vmem:[#allocation9] sm:$0xff]   ;;  %v405_v51 = vsub.s32 3, %v97_v13 }
  0x41   :  { %v99_v16 = vrot.slane %v91_v15, %v98_v14  ;;  %v172_v30 = vrot.slane %v91_v15, %v171_v29  ;;  %v256_v42 = vrot.slane %v91_v15, %v255_v41 }
  0x42   :  { %459 = vmatpush3.bf16.msra.mxu0 %v510_v2  ;;  %467 = vmatpush3.bf16.msra.mxu1 %v512_v6  ;;  %v406_v52 = vrot.slane %v91_v15, %v405_v51 }
  0x43   :  { %476 = vmatprep.subr.bf16.mxu0 %v636_v0  ;;  %468 = vmatprep.subr.bf16.mxu1 %v636_v0 }
  0x45   :  { %461 = vmatmul.mubr.msk.bf16.vlgmr.msra.gmra.mxu0 %vm109_vm2, %v92_v7 }
  0x46   :  { %484 = vmatprep.mubr.msk.bf16.mxu0 %vm637_vm0, %v636_v0  ;;  %469 = vmatpush3.bf16.msra.mxu1 %v513_v8 }
  0x47   :  { %470 = vmatprep.subr.bf16.mxu1 %v636_v0  ;;  %477 = vmatpush3.bf16.msra.mxu0 %v515_v10 }
  0x48   :  { %478 = vmatprep.subr.bf16.mxu0 %v636_v0 }
  0x4a   :  { %471 = vmatpush3.bf16.msra.mxu1 %v514_v9 }
  0x4b   :  { %488 = vmatprep.subr.bf16.mxu1 %v636_v0  ;;  %479 = vmatpush3.bf16.msra.mxu0 %v516_v11 }
  0x4c   :  { %480 = vmatprep.subr.bf16.mxu0 %v636_v0 }
  0x4f   :  { %481 = vmatpush3.bf16.msra.mxu0 %v517_v25 }
  0x50   :  { %482 = vmatprep.subr.bf16.mxu0 %v636_v0 }
  0x53   :  { %483 = vmatpush3.bf16.msra.mxu0 %v518_v26 }
 0x105   :  { %v151_v17 = vpop.f32.mrf.mxu0 }
 0x106   :  { %v152_v18 = vadd.f32 %v151_v17, %v99_v16 }
 0x107   :  { %v462_v19 = vpop.f32.mrf.mxu0 }
 0x108   :  { %vm157_vm3 = vcmp.gt.f32.partialorder %v152_v18, 0.0  ;;  %v158_v20 = vmul.f32 0.01, %v152_v18 }
 0x109   :  { %v154_v21 = vpop.f32.mrf.mxu0 }
 0x10a   :  { %v159_v22 = vsel %vm157_vm3, %v152_v18, %v158_v20 }
 0x10b   :  { %v160_v23 = vpack.c.bf16 %v159_v22, %v159_v22  ;;  %v463_v24 = vpop.f32.mrf.mxu0 }
 0x10d   :  { %473 = vmatmul.mubr.msk.bf16.vlgmr.msra.gmra.mxu1 %vm197_vm4, %v160_v23 }
 0x10e   :  { %496 = vmatprep.mubr.msk.bf16.mxu1 %vm637_vm0, %v636_v0  ;;  %489 = vmatpush3.bf16.msra.mxu1 %v519_v27 }
 0x10f   :  { %490 = vmatprep.subr.bf16.mxu1 %v636_v0 }
 0x112   :  { %491 = vmatpush3.bf16.msra.mxu1 %v520_v28 }
 0x113   :  { %492 = vmatprep.subr.bf16.mxu1 %v636_v0 }
 0x116   :  { %493 = vmatpush3.bf16.msra.mxu1 %v521_v39 }
 0x117   :  { %494 = vmatprep.subr.bf16.mxu1 %v636_v0 }
 0x11a   :  { %495 = vmatpush3.bf16.msra.mxu1 %v522_v40 }
 0x1cd   :  { %v235_v31 = vpop.f32.mrf.mxu1 }
 0x1ce   :  { %v236_v32 = vadd.f32 %v235_v31, %v172_v30 }
 0x1cf   :  { %v474_v33 = vpop.f32.mrf.mxu1 }
 0x1d0   :  { %vm241_vm5 = vcmp.gt.f32.partialorder %v236_v32, 0.0  ;;  %v242_v34 = vmul.f32 0.01, %v236_v32 }
 0x1d1   :  { %v238_v35 = vpop.f32.mrf.mxu1 }
 0x1d2   :  { %v243_v36 = vsel %vm241_vm5, %v236_v32, %v242_v34 }
 0x1d3   :  { %v244_v37 = vpack.c.bf16 %v243_v36, %v243_v36  ;;  %v475_v38 = vpop.f32.mrf.mxu1 }
 0x1d5   :  { %485 = vmatmul.mubr.msk.bf16.vlgmr.msra.gmra.mxu0 %vm197_vm4, %v244_v37 }
 0x295   :  { %v318_v43 = vpop.f32.mrf.mxu0 }
 0x296   :  { %v319_v44 = vadd.f32 %v318_v43, %v256_v42 }
 0x297   :  { %v486_v45 = vpop.f32.mrf.mxu0 }
 0x298   :  { %vm324_vm6 = vcmp.gt.f32.partialorder %v319_v44, 0.0  ;;  %v325_v46 = vmul.f32 0.01, %v319_v44 }
 0x299   :  { %v321_v47 = vpop.f32.mrf.mxu0 }
 0x29a   :  { %v326_v48 = vsel %vm324_vm6, %v319_v44, %v325_v46 }
 0x29b   :  { %v327_v49 = vpack.c.bf16 %v326_v48, %v326_v48  ;;  %v487_v50 = vpop.f32.mrf.mxu0 }
 0x29d   :  { %497 = vmatmul.mubr.msk.bf16.vlgmr.msra.gmra.mxu1 %vm197_vm4, %v327_v49 }
 0x35d   :  { %v397_v53 = vpop.f32.mrf.mxu1 }
 0x35e   :  { %v407_v54 = vadd.f32 %v406_v52, %v397_v53 }
 0x35f   :  { %v498_v55 = vpop.f32.mrf.mxu1 }
 0x360   :  { %vm408_vm7 = vcmp.gt.f32.partialorder %v407_v54, 0.0  ;;  %v409_v56 = vmul.f32 0.01, %v407_v54 }
 0x361   :  { %v400_v57 = vpop.f32.mrf.mxu1 }
 0x362   :  { %v410_v58 = vsel %vm408_vm7, %v407_v54, %v409_v56 }
 0x363   :  { %412 = vst.msk [vmem:[%s737_s6] sm:$0xff] %vm411_vm8, %v410_v58  ;;  %v499_v59 = vpop.f32.mrf.mxu1 }
 0x364   :  { %417 = vsyncpa [#allocation3], 1 }
 0x365   :  { %418 = vsyncpa [#allocation5], 1 }
 0x366   :  { %419 = vsyncpa [#allocation8], 1 }

</bundles_post_ra>
